<compile_context>
chip_gen: v7x
topology: tpu7x:2x2x1
jax: 0.10.0
libtpu: 0.0.40
codegen_flags: <defaults>
</compile_context>

<pallas_src>
import functools

import jax
import jax.numpy as jnp
from jax.experimental import pallas as pl
from jax.experimental.pallas import tpu as pltpu


# ----------------------------------------------------------------------------
# Small helpers.
# ----------------------------------------------------------------------------
def _round_up(x, m):
    return ((x + m - 1) // m) * m


def _full_spec(shape):
    """Whole array as one block (constant index map) for a 1-D grid."""
    zeros = (0,) * len(shape)
    return pl.BlockSpec(shape, lambda i, _z=zeros: _z)


def _layernorm(v, w, b, eps=1e-6):
    # eps=1e-6 matches nn.LayerNorm(dim, eps=1e-06) used by the reference module.
    mu = jnp.mean(v, axis=-1, keepdims=True)
    var = jnp.mean((v - mu) ** 2, axis=-1, keepdims=True)
    return (v - mu) * jax.lax.rsqrt(var + eps) * w + b


# ----------------------------------------------------------------------------
# Linear kernel:  out = x @ W + b   (patch-embed projection), tiled over M.
# ----------------------------------------------------------------------------
def _linear_kernel(x_ref, w_ref, b_ref, o_ref):
    o_ref[...] = (
        jnp.dot(x_ref[...], w_ref[...], preferred_element_type=jnp.float32)
        + b_ref[...]
    )


def pallas_linear(x, w, b, *, block_m=256):
    # x: (M, K), w: (K, N), b: (1, N).  M-tiled so HBM loads overlap MXU work
    # and the M axis can be sharded across TensorCores (v7x megacore).
    M, K = x.shape
    N = w.shape[1]
    bm = min(block_m, M)
    return pl.pallas_call(
        _linear_kernel,
        out_shape=jax.ShapeDtypeStruct((M, N), jnp.float32),
        grid=(pl.cdiv(M, bm),),
        in_specs=[
            pl.BlockSpec((bm, K), lambda i: (i, 0)),
            pl.BlockSpec((K, N), lambda i: (0, 0)),
            pl.BlockSpec((1, N), lambda i: (0, 0)),
        ],
        out_specs=pl.BlockSpec((bm, N), lambda i: (i, 0)),
        compiler_params=pltpu.CompilerParams(dimension_semantics=("parallel",)),
    )(x, w, b)


# ----------------------------------------------------------------------------
# Fused transformer-encoder block kernel (Bt batch samples per grid step).
# ----------------------------------------------------------------------------
def _encoder_kernel(
    x_ref,
    ln1w_ref, ln1b_ref,
    wq_ref, wk_ref, wv_ref,
    bq_ref, bk_ref, bv_ref,
    wproj_ref, bproj_ref,
    ln2w_ref, ln2b_ref,
    w1_ref, b1_ref,
    w2_ref, b2_ref,
    o_ref,
    *, n_heads, n_valid, scale,
):
    Bt, Np, D = x_ref.shape
    M = Bt * Np

    x = x_ref[...].reshape(M, D)                       # leading-dim merge (Np % 8 == 0)
    xn = _layernorm(x, ln1w_ref[...], ln1b_ref[...])   # (M, D)
    xn3 = xn.reshape(Bt, Np, D)

    wq = wq_ref[...]; wk = wk_ref[...]; wv = wv_ref[...]    # (H, D, hd) each
    bq = bq_ref[...]; bk = bk_ref[...]; bv = bv_ref[...]    # (H, 1, hd) each
    wproj = wproj_ref[...]                                   # (H, hd, D)

    # Mask for padded key tokens (static shapes -> built from a 2-D iota).
    if n_valid < Np:
        col = jax.lax.broadcasted_iota(jnp.int32, (1, Np), 1)
        key_mask = col < n_valid                             # (1, Np), broadcasts over (H, Nq, Nk)
    else:
        key_mask = None

    # ---- attention: per sample, all heads batched through the MXU -----------
    attn_chunks = []
    for b in range(Bt):                                      # small static loop (2-8 samples)
        xb = jnp.broadcast_to(xn3[b][None, :, :], (n_heads, Np, D))
        # head-major projections: batched dot_general, contraction depth = D.
        q = jnp.einsum('hnd,hde->hne', xb, wq,
                       preferred_element_type=jnp.float32) + bq
        k = jnp.einsum('hnd,hde->hne', xb, wk,
                       preferred_element_type=jnp.float32) + bk
        v = jnp.einsum('hnd,hde->hne', xb, wv,
                       preferred_element_type=jnp.float32) + bv
        q = q * scale
        # scores without any explicit k.T: contraction on the last dim of both.
        s = jnp.einsum('hqe,hke->hqk', q, k,
                       preferred_element_type=jnp.float32)   # (H, Np, Np)
        if key_mask is not None:
            s = jnp.where(key_mask, s, jnp.float32(-1e30))
        s = s - jnp.max(s, axis=-1, keepdims=True)
        p = jnp.exp(s)
        # EUP reciprocal + VPU multiply instead of a divide on the (N, N) tile.
        p = p * pl.reciprocal(jnp.sum(p, axis=-1, keepdims=True), approx=True)
        o = jnp.einsum('hqk,hke->hqe', p, v,
                       preferred_element_type=jnp.float32)   # (H, Np, hd)
        # output projection: one batched matmul + a cheap cross-head reduction
        # (mathematically identical to concat(heads) @ Wproj).
        pr = jnp.einsum('hqe,hed->hqd', o, wproj,
                        preferred_element_type=jnp.float32)  # (H, Np, D)
        attn_chunks.append(jnp.sum(pr, axis=0))              # (Np, D)
    attn = attn_chunks[0] if Bt == 1 else jnp.concatenate(attn_chunks, axis=0)
    x = x + attn + bproj_ref[...]

    # ---- MLP branch (single wide GEMMs over all Bt*Np rows) -----------------
    xn2 = _layernorm(x, ln2w_ref[...], ln2b_ref[...])
    h1 = jnp.dot(xn2, w1_ref[...], preferred_element_type=jnp.float32) + b1_ref[...]
    # TODO(synk): PyTorch nn.GELU() uses the exact erf formulation; tanh
    # approximation kept because erf lowering in Mosaic is not guaranteed.
    h1 = jax.nn.gelu(h1, approximate=True)
    h2 = jnp.dot(h1, w2_ref[...], preferred_element_type=jnp.float32) + b2_ref[...]

    o_ref[...] = (x + h2).reshape(Bt, Np, D)


def encoder_block(x, p, n_heads, *, n_valid, block_b=4):
    B, Np, D = x.shape
    hd = D // n_heads
    scale = hd ** (-0.5)

    # Per-head weight views prepared in plain JAX (outside the kernel), so the
    # kernel never has to lane-slice qkv or transpose 4-D activations.
    wqkv = p["wqkv"]                          # (D, 3D), column order [q | k | v]
    bqkv = p["bqkv"]                          # (1, 3D)

    def split_w(i):
        return wqkv[:, i * D:(i + 1) * D].reshape(D, n_heads, hd).transpose(1, 0, 2)

    def split_b(i):
        return bqkv[:, i * D:(i + 1) * D].reshape(n_heads, 1, hd)

    wq, wk, wv = split_w(0), split_w(1), split_w(2)           # (H, D, hd)
    bq, bk, bv = split_b(0), split_b(1), split_b(2)           # (H, 1, hd)
    wproj_h = p["wproj"].reshape(n_heads, hd, D)              # (H, hd, D)

    # Fold several batch samples into one grid step (amortizes per-step
    # overhead and fattens the M dimension of the proj/MLP GEMMs).
    Bt = 1
    for cand in (8, 4, 2, 1):
        if cand <= block_b and cand <= B and B % cand == 0:
            Bt = cand
            break

    kern = functools.partial(
        _encoder_kernel, n_heads=n_heads, n_valid=n_valid, scale=scale
    )
    weights = [
        p["ln1_w"], p["ln1_b"],
        wq, wk, wv, bq, bk, bv,
        wproj_h, p["bproj"],
        p["ln2_w"], p["ln2_b"],
        p["w1"], p["b1"],
        p["w2"], p["b2"],
    ]
    in_specs = [pl.BlockSpec((Bt, Np, D), lambda i: (i, 0, 0))] + [
        _full_spec(w.shape) for w in weights
    ]
    return pl.pallas_call(
        kern,
        out_shape=jax.ShapeDtypeStruct((B, Np, D), jnp.float32),
        grid=(B // Bt,),
        in_specs=in_specs,
        out_specs=pl.BlockSpec((Bt, Np, D), lambda i: (i, 0, 0)),
        compiler_params=pltpu.CompilerParams(
            dimension_semantics=("parallel",),
            # Above the 16/32 MiB scoped defaults, within every generation's
            # physical VMEM (64 MiB on v7x, 128 MiB on v5e/v6e).  For ViT-Base
            # sized D, additionally use bf16 weights / split the MLP.
            vmem_limit_bytes=64 * 1024 * 1024,
        ),
    )(x, *weights)


# ----------------------------------------------------------------------------
# Final LayerNorm + classification head kernel (cls token), tiled over rows.
# ----------------------------------------------------------------------------
def _head_kernel(x_ref, lnw_ref, lnb_ref, w_ref, b_ref, o_ref):
    xn = _layernorm(x_ref[...], lnw_ref[...], lnb_ref[...])
    o_ref[...] = (
        jnp.dot(xn, w_ref[...], preferred_element_type=jnp.float32) + b_ref[...]
    )


def final_head(x_cls, lnw, lnb, w, b, *, block_m=256):
    B, D = x_cls.shape
    n_classes = w.shape[1]
    bm = min(block_m, B)
    return pl.pallas_call(
        _head_kernel,
        out_shape=jax.ShapeDtypeStruct((B, n_classes), jnp.float32),
        grid=(pl.cdiv(B, bm),),
        in_specs=[
            pl.BlockSpec((bm, D), lambda i: (i, 0)),
            pl.BlockSpec((1, D), lambda i: (0, 0)),
            pl.BlockSpec((1, D), lambda i: (0, 0)),
            pl.BlockSpec((D, n_classes), lambda i: (0, 0)),
            pl.BlockSpec((1, n_classes), lambda i: (0, 0)),
        ],
        out_specs=pl.BlockSpec((bm, n_classes), lambda i: (i, 0)),
        compiler_params=pltpu.CompilerParams(dimension_semantics=("parallel",)),
    )(x_cls, lnw, lnb, w, b)


# ----------------------------------------------------------------------------
# Patch embedding: stride==kernel Conv2d == per-patch matmul.
# patch_w corresponds to torch_conv.weight.reshape(D, C*ps*ps).T, i.e. the
# patch vector is flattened in (C, kh, kw) order — matching the
# transpose(0,2,4,1,3,5) below.
# ----------------------------------------------------------------------------
def patch_embed(x, w, b, patch_size):
    B, C, H, W = x.shape
    ph, pw = H // patch_size, W // patch_size
    patches = x.reshape(B, C, ph, patch_size, pw, patch_size)
    patches = patches.transpose(0, 2, 4, 1, 3, 5).reshape(
        B * ph * pw, C * patch_size * patch_size
    )
    out = pallas_linear(patches, w, b)              # (B*n_patches, D)
    return out.reshape(B, ph * pw, -1)


# ----------------------------------------------------------------------------
# Full ViT forward.
# ----------------------------------------------------------------------------
def vit_forward(x, params, *, patch_size, n_heads):
    B = x.shape[0]
    tokens = patch_embed(x, params["patch_w"], params["patch_b"], patch_size)
    D = tokens.shape[-1]
    cls = jnp.broadcast_to(params["cls_token"], (B, 1, D))
    tokens = jnp.concatenate([cls, tokens], axis=1)           # (B, 1+P, D)
    tokens = tokens + params["pos_embed"]                     # dropout p=0 -> identity
    n_tokens = tokens.shape[1]

    # Pad token count to a multiple of 8 (f32 sublane) for dense vregs; padded
    # keys are masked inside every attention softmax.
    n_pad = _round_up(n_tokens, 8)
    if n_pad != n_tokens:
        tokens = jnp.pad(tokens, ((0, 0), (0, n_pad - n_tokens), (0, 0)))

    # TODO(synk): on v5e, overlap next-layer weight DMA with current-layer
    # compute via cross-call prefetch; each layer currently streams its own
    # weights at call start.
    for blk in params["blocks"]:
        tokens = encoder_block(tokens, blk, n_heads, n_valid=n_tokens)

    cls_final = tokens[:, 0, :]                               # (B, D)
    return final_head(
        cls_final, params["norm_w"], params["norm_b"],
        params["head_w"], params["head_b"],
    )


# ----------------------------------------------------------------------------
# Deterministic parameter init (synthetic; shapes follow the PyTorch module).
# ----------------------------------------------------------------------------
def init_params(key, *, img_size, patch_size, in_chans, embed_dim, depth,
                n_heads, mlp_ratio, n_classes):
    n_patches = (img_size // patch_size) ** 2
    patch_dim = in_chans * patch_size * patch_size
    mid = int(embed_dim * mlp_ratio)

    def w_init(k, shape):
        return (0.02 * jax.random.normal(k, shape)).astype(jnp.float32)

    keys = jax.random.split(key, 4 + depth)
    params = {
        "patch_w": w_init(keys[0], (patch_dim, embed_dim)),
        "patch_b": jnp.zeros((1, embed_dim), jnp.float32),
        "cls_token": w_init(keys[1], (1, 1, embed_dim)),
        "pos_embed": w_init(keys[2], (1, 1 + n_patches, embed_dim)),
        "head_w": w_init(keys[3], (embed_dim, n_classes)),
        "head_b": jnp.zeros((1, n_classes), jnp.float32),
        "norm_w": jnp.ones((1, embed_dim), jnp.float32),
        "norm_b": jnp.zeros((1, embed_dim), jnp.float32),
        "blocks": [],
    }
    for d in range(depth):
        bk = jax.random.split(keys[4 + d], 4)
        params["blocks"].append({
            "ln1_w": jnp.ones((1, embed_dim), jnp.float32),
            "ln1_b": jnp.zeros((1, embed_dim), jnp.float32),
            "wqkv": w_init(bk[0], (embed_dim, 3 * embed_dim)),
            "bqkv": jnp.zeros((1, 3 * embed_dim), jnp.float32),
            "wproj": w_init(bk[1], (embed_dim, embed_dim)),
            "bproj": jnp.zeros((1, embed_dim), jnp.float32),
            "ln2_w": jnp.ones((1, embed_dim), jnp.float32),
            "ln2_b": jnp.zeros((1, embed_dim), jnp.float32),
            "w1": w_init(bk[2], (embed_dim, mid)),
            "b1": jnp.zeros((1, mid), jnp.float32),
            "w2": w_init(bk[3], (mid, embed_dim)),
            "b2": jnp.zeros((1, embed_dim), jnp.float32),
        })
    return params


if __name__ == "__main__":
    # Small ViT config consistent with the module's forward.
    B, C, IMG, PS = 2, 3, 16, 4
    EMBED, DEPTH, HEADS, MLP_RATIO, N_CLASSES = 32, 2, 4, 4.0, 2

    key = jax.random.PRNGKey(0)
    k_x, k_p = jax.random.split(key)
    x = jax.random.normal(k_x, (B, C, IMG, IMG), dtype=jnp.float32)  # NCHW

    params = init_params(
        k_p, img_size=IMG, patch_size=PS, in_chans=C, embed_dim=EMBED,
        depth=DEPTH, n_heads=HEADS, mlp_ratio=MLP_RATIO, n_classes=N_CLASSES,
    )

    logits = vit_forward(x, params, patch_size=PS, n_heads=HEADS)
    logits = jax.block_until_ready(logits)
    assert logits.shape == (B, N_CLASSES)
    print("KERNEL_OK")
</pallas_src>

<mosaic_0001>
module attributes {stable_mosaic.version = 11 : i64} {
  func.func @_linear_kernel(%arg0: i32, %arg1: memref<32x48xf32, #tpu.memory_space<vmem>>, %arg2: memref<48x32xf32, #tpu.memory_space<vmem>>, %arg3: memref<1x32xf32, #tpu.memory_space<vmem>>, %arg4: memref<32x32xf32, #tpu.memory_space<vmem>>) attributes {dimension_semantics = [#tpu.dimension_semantics<parallel>], iteration_bounds = array<i64: 1>, scalar_prefetch = 0 : i64, scratch_operands = 0 : i64, tpu.core_type = #tpu.core_type<tc>, window_params = [{transform_indices = @transform_0, window_bounds = array<i64: 32, 48>}, {pipeline_mode = #tpu.pipeline_mode<synchronous>, transform_indices = @transform_1, window_bounds = array<i64: 48, 32>}, {pipeline_mode = #tpu.pipeline_mode<synchronous>, transform_indices = @transform_2, window_bounds = array<i64: 1, 32>}, {transform_indices = @transform_3, window_bounds = array<i64: 32, 32>}]} {
    %c0 = arith.constant 0 : index
    %c0_0 = arith.constant 0 : index
    %0 = vector.load %arg1[%c0, %c0_0] : memref<32x48xf32, #tpu.memory_space<vmem>>, vector<32x48xf32>
    %c0_1 = arith.constant 0 : index
    %c0_2 = arith.constant 0 : index
    %1 = vector.load %arg2[%c0_1, %c0_2] : memref<48x32xf32, #tpu.memory_space<vmem>>, vector<48x32xf32>
    %cst = arith.constant dense<0.000000e+00> : vector<32x32xf32>
    %2 = tpu.matmul %0, %1, %cst {dimension_numbers = #tpu.dot_dimension_numbers<[1], [0], [0], [1], [0, 0, 1, 1], [], []>} : vector<32x48xf32>, vector<48x32xf32>, vector<32x32xf32> -> vector<32x32xf32>
    %c0_3 = arith.constant 0 : index
    %c0_4 = arith.constant 0 : index
    %3 = vector.load %arg3[%c0_3, %c0_4] : memref<1x32xf32, #tpu.memory_space<vmem>>, vector<1x32xf32>
    %4 = vector.broadcast %3 : vector<1x32xf32> to vector<32x32xf32>
    %5 = arith.addf %2, %4 : vector<32x32xf32>
    %c0_5 = arith.constant 0 : index
    %c0_6 = arith.constant 0 : index
    %6 = vector.load %arg4[%c0_5, %c0_6] : memref<32x32xf32, #tpu.memory_space<vmem>>, vector<32x32xf32>
    tpu.vector_store %arg4[%c0_5, %c0_6], %5 {strides = array<i32>} : memref<32x32xf32, #tpu.memory_space<vmem>>, vector<32x32xf32>,
    return
  }
  func.func @transform_0(%arg0: i32) -> (i32, i32) {
    %c0_i32 = arith.constant 0 : i32
    %c0_i32_0 = arith.constant 0 : i32
    return %arg0, %c0_i32 : i32, i32
  }
  func.func @transform_1(%arg0: i32) -> (i32, i32) {
    %c0_i32 = arith.constant 0 : i32
    %c0_i32_0 = arith.constant 0 : i32
    %c0_i32_1 = arith.constant 0 : i32
    return %c0_i32, %c0_i32_0 : i32, i32
  }
  func.func @transform_2(%arg0: i32) -> (i32, i32) {
    %c0_i32 = arith.constant 0 : i32
    %c0_i32_0 = arith.constant 0 : i32
    %c0_i32_1 = arith.constant 0 : i32
    return %c0_i32, %c0_i32_0 : i32, i32
  }
  func.func @transform_3(%arg0: i32) -> (i32, i32) {
    %c0_i32 = arith.constant 0 : i32
    %c0_i32_0 = arith.constant 0 : i32
    return %arg0, %c0_i32 : i32, i32
  }
}

</mosaic_0001>

<bundles_post_ra>
// kernel: tpu_custom_call.1
= control target key start
LH: loop header
LB: loop body
LE: loop exit
PB: predicated region body
PF: predicated region fallthrough
CT: control target
= control target key end

     0   :  { %vm32_vm0 = vcmask 392192   ;;  %s301_s0 = inlined_call_operand.vmem [shape: f32[32,48], index: 0, kind: input, shape index: {}]   ;;  %s302_s1 = inlined_call_operand.vmem [shape: f32[48,32], index: 1, kind: input, shape index: {}]   ;;  %s303_s2 = inlined_call_operand.vmem [shape: f32[1,32], index: 2, kind: input, shape index: {}]   ;;  %s304_s3 = inlined_call_operand.hbm [shape: f32[32,32], index: 3, kind: output, shape index: {}]  }
   0x1   :  { %v19_v0 = vld [vmem:[%s302_s1] sm:$0xff]  ;;  %v20_v1 = vld [vmem:[%s302_s1 + $0x8] sm:$0xff]  ;;  %v21_v2 = vld [vmem:[%s302_s1 + $0x10] sm:$0xff] }
   0x2   :  { %v184_v3 = vpack.c.bf16 %v20_v1, %v19_v0  ;;  %v22_v4 = vld [vmem:[%s302_s1 + $0x18] sm:$0xff]  ;;  %v23_v6 = vld [vmem:[%s302_s1 + $0x20] sm:$0xff]  ;;  %v24_v7 = vld [vmem:[%s302_s1 + $0x28] sm:$0xff] }
   0x3   :  { %v188_v5 = vpack.c.bf16 %v22_v4, %v21_v2  ;;  %v15_v8 = vld [vmem:[%s301_s0] sm:$0xff]  ;;  %v17_v9 = vld [vmem:[%s301_s0 + $0x10] sm:$0xff] }
   0x4   :  { %185 = vmatprep.subr.bf16.mxu0 %v184_v3  ;;  %196 = vmatprep.subr.bf16.mxu1 %v184_v3 }
   0x5   :  { %8 = vsyncpa [#allocation3], 0  ;;  %187 = vmatpush3.bf16.msra.mxu0 %v184_v3  ;;  %199 = vmatpush3.bf16.msra.mxu1 %v184_v3  ;;  %v192_v10 = vpack.c.bf16 %v24_v7, %v23_v6  ;;  %v16_v11 = vld [vmem:[%s301_s0 + $0x8] sm:$0xff]  ;;  %v18_v12 = vld [vmem:[%s301_s0 + $0x18] sm:$0xff]  ;;  %s229_s6 = smov [#allocation2]   ;;  %vm130_vm1 = vcmask 261120  }
   0x6   :  { %189 = vmatprep.subr.bf16.mxu0 %v188_v5  ;;  %197 = vmatprep.subr.bf16.mxu1 %v188_v5  ;;  %v151_v13 = vld [vmem:[%s303_s2] ss:$0 sm:$0xff]  ;;  %s140_s7 = sshll.u32 %s229_s6, 4  ;;  %s141_s7 = int_to_ptr.vmem [resolvable:$true] %s140_s7 }
   0x7   :  { %178 = vmatprep.mubr.msk.f32.mxu0 %vm32_vm0, %v15_v8  ;;  %181 = vmatprep.mubr.msk.f32.mxu1 %vm32_vm0, %v17_v9  ;;  %s205_s0 = scalar_lea.vmem %s141_s7, 512  ;;  %p210_p1 = scmp.lt.s32.totalorder %s141_s7, %s141_s7 }
   0x8   :  { %p206_p0 = scmp.ne.s32.totalorder %s141_s7, %s205_s0  ;;  %p211_p2 = scmp.lt.s32.totalorder %s205_s0, %s205_s0 }
   0x9   :  { %191 = vmatpush3.bf16.msra.mxu0 %v188_v5  ;;  %200 = vmatpush3.bf16.msra.mxu1 %v188_v5 }
   0xa   :  { %193 = vmatprep.subr.bf16.mxu0 %v192_v10  ;;  %198 = vmatprep.subr.bf16.mxu1 %v192_v10  ;;  %p212_p3 = por %p211_p2, %p210_p1 }
   0xc   :  { %p213_p4 = pnand %p212_p3, %p206_p0 }
   0xd   :  { %195 = vmatpush3.bf16.msra.mxu0 %v192_v10  ;;  %201 = vmatpush3.bf16.msra.mxu1 %v192_v10 }
  0x10   :  { %179 = vmatmul.mubr.msk.f32.vlgmr.msra.gmra.mrb[0].mxu0 %vm32_vm0, %v16_v11  ;;  %182 = vmatmul.mubr.msk.f32.vlgmr.msra.gmra.mrb[0].mxu1 %vm32_vm0, %v18_v12 }
  0xe3   :  { %v180_v14 = vpop.f32.mrb[0].mxu0  ;;  %v183_v15 = vpop.f32.mrb[0].mxu1 }
  0xe4   :  { %v117_v16 = vadd.f32 %v180_v14, %v151_v13  ;;  %v127_v17 = vadd.f32 %v183_v15, %v151_v13  ;;  %v111_v18 = vpop.f32.mrb[1].mxu0  ;;  %v121_v19 = vpop.f32.mrb[1].mxu1 }
  0xe5   :  { %v112_v20 = vadd.f32 %v151_v13, %v111_v18  ;;  %v122_v21 = vadd.f32 %v151_v13, %v121_v19 }
  0xe6   :  { %132 = vst.msk [vmem:[#allocation2 + $0x8] sm:$0xff] %vm130_vm1, %v117_v16  ;;  %134 = vst.msk [vmem:[#allocation2 + $0x18] sm:$0xff] %vm130_vm1, %v127_v17 }
  0xe7   :  { %131 = vst.msk [vmem:[#allocation2] sm:$0xff] %vm130_vm1, %v112_v20  ;;  %133 = vst.msk [vmem:[#allocation2 + $0x10] sm:$0xff] %vm130_vm1, %v122_v21 }
  0xe8   :  { %216 = shalt.err (!%p213_p4)
}
  0xe9   :  { %s217_s9 = scalar_lea.hbm %s304_s3, 512 }
  0xea   :  { %p218_p5 = scmp.ne.s32.totalorder %s304_s3, %s217_s9  ;;  %p221_p6 = scmp.lt.u32.totalorder %s217_s9, %s304_s3 }
  0xec   :  { %p223_p7 = pnand %p221_p6, %p218_p5 }
  0xee   :  { %226 = shalt.err (!%p223_p7)
}
  0xef   :  { %s230_s14 = smov 128   ;;  %s231_s15 = smov 8  }
  0xf0   :  { %146 = dma.vmem_to_hbm [thread:$0]  %s141_s7, 512, %s304_s3, [#allocation3], %s230_s14, %s230_s14, %s231_s15  }
  0xf1   :  { %227 = dma.done.wait [#allocation3], 512  }
  0xf2   :  { %228 = vsyncadd [#allocation3], 4294966784 }
  0xf3   :  { %150 = vsyncpa [#allocation3], 1 }

</bundles_post_ra>
